<compile_context>
chip_gen: v7x
topology: tpu7x:2x2x1
jax: 0.10.0
libtpu: 0.0.40
codegen_flags: <defaults>
</compile_context>

<pallas_src>
import jax
import jax.numpy as jnp
from jax import lax
from jax.experimental import pallas as pl
from jax.experimental.pallas import tpu as pltpu


def _gat_kernel(h_ref, bias_ref, w_ref, asrc_ref, adst_ref, out_ref, z_ref, ssrc_ref):
    hd = pl.program_id(1)          # head (inner grid axis)
    tile = bias_ref.shape[0]       # TILE_DST (static)

    # ---- once per head: fill z[hd] and the lane-major s_src row (at dst-tile 0) ----
    @pl.when(pl.program_id(0) == 0)
    def _():
        z = jnp.dot(h_ref[...], w_ref[hd], preferred_element_type=jnp.float32)   # (N, D)
        z_ref[hd] = z
        # s_src as a lane-major (1, N) row: contract on out_dim -> no cross-lane transpose.
        ssrc_ref[hd] = lax.dot_general(
            asrc_ref[hd], z,
            dimension_numbers=(((1,), (1,)), ((), ())),
            preferred_element_type=jnp.float32,
        )

    # ---- per (dst tile, head) ------------------------------------------------------
    row0 = pl.multiple_of(pl.program_id(0) * tile, tile)
    z_dst = z_ref[hd, pl.ds(row0, tile), :]                                # (T, D)
    s_dst = jnp.sum(z_dst * adst_ref[hd], axis=-1, keepdims=True)          # (T, 1)

    logits = s_dst + ssrc_ref[hd]                                          # (T, N)
    e = jnp.where(logits > 0, logits, 0.01 * logits)                       # leaky_relu(0.01)
    masked = e + bias_ref[...].astype(jnp.float32)                         # additive adjacency mask

    m = jnp.max(masked, axis=-1, keepdims=True)
    p = jnp.exp(masked - m)                                                # (T, N)
    denom = jnp.sum(p, axis=-1, keepdims=True)                             # (T, 1)

    # Fold 1/denom into the (T, D) result instead of dividing the (T, N) alpha.
    out = jnp.dot(p, z_ref[hd], preferred_element_type=jnp.float32)        # (T, D)
    out_ref[0] = (out * pl.reciprocal(denom, approx=True)).astype(out_ref.dtype)


def _pick_tile(n, cap=512):
    t = min(n, cap)
    t -= t % 8
    while t > 8 and n % t:
        t -= 8
    return t if (t >= 8 and n % t == 0) else n


def multi_head_gat(h, adj, W, a_src, a_dst, merge="cat", tile_dst=None):
    num_heads, in_dim, out_dim = W.shape
    n_orig = h.shape[0]

    # Pad N to a sublane multiple so arbitrary graph sizes work. Padded dst rows are
    # sliced off afterwards; padded src columns are excluded by the additive mask.
    pad = (-n_orig) % 8
    if pad:
        h = jnp.pad(h, ((0, pad), (0, 0)))
        adj = jnp.pad(adj, ((0, pad), (0, pad)))
    N = n_orig + pad

    if tile_dst is None:
        tile_dst = _pick_tile(N)
    assert N % tile_dst == 0, "TILE_DST must divide (padded) N"
    num_tiles = N // tile_dst

    # Additive mask precomputed once in the wrapper; bf16 halves the dominant N^2 stream.
    bias = jnp.where(adj > 0, 0.0, -1e30).astype(jnp.bfloat16)

    cost = pl.CostEstimate(
        flops=2 * num_heads * (N * in_dim * out_dim + 2 * N * out_dim
                               + N * N + N * N * out_dim),
        transcendentals=num_heads * N * N,
        bytes_accessed=(4 * (N * in_dim
                             + num_heads * (in_dim * out_dim + 2 * out_dim)
                             + num_heads * N * out_dim)
                        + 2 * N * N),
    )

    per_head = pl.pallas_call(
        _gat_kernel,
        out_shape=jax.ShapeDtypeStruct((num_heads, N, out_dim), jnp.float32),
        grid_spec=pltpu.PrefetchScalarGridSpec(
            num_scalar_prefetch=0,
            grid=(num_tiles, num_heads),  # heads innermost -> mask tile re-used H times
            in_specs=[
                pl.BlockSpec((N, in_dim), lambda i, hd: (0, 0)),                       # h (resident)
                pl.BlockSpec((tile_dst, N), lambda i, hd: (i, 0)),                     # bf16 mask tile
                pl.BlockSpec((num_heads, in_dim, out_dim), lambda i, hd: (0, 0, 0)),   # W (resident)
                pl.BlockSpec((num_heads, 1, out_dim), lambda i, hd: (0, 0, 0)),        # a_src
                pl.BlockSpec((num_heads, 1, out_dim), lambda i, hd: (0, 0, 0)),        # a_dst
            ],
            out_specs=pl.BlockSpec((1, tile_dst, out_dim), lambda i, hd: (hd, i, 0)),
            scratch_shapes=[
                pltpu.VMEM((num_heads, N, out_dim), jnp.float32),  # z for every head
                pltpu.VMEM((num_heads, 1, N), jnp.float32),        # s_src rows per head
            ],
        ),
        compiler_params=pltpu.CompilerParams(
            # Heads sit on the inner axis for mask-DMA reuse; both axes stay
            # "arbitrary" (z scratch is filled at dst-tile 0 per head, so the
            # tile axis must run in order; Mosaic wants parallel dims leading).
            dimension_semantics=("arbitrary", "arbitrary"),
            vmem_limit_bytes=32 * 1024 * 1024,
        ),
        cost_estimate=cost,
    )(h, bias, W, a_src, a_dst)

    per_head = per_head[:, :n_orig, :]

    if merge == "cat":
        # torch.cat(head_outs, dim=1): (N, H*out_dim), head-major column blocks.
        # TODO(synk): emit the cat layout directly from the kernel (needs a lane-dense
        # (TILE_DST, H*out_dim) output block) to drop this extra HBM pass over the output.
        return jnp.transpose(per_head, (1, 0, 2)).reshape(n_orig, num_heads * out_dim)
    # Matches the original module exactly: torch.mean(torch.stack(head_outs)) -> scalar.
    return jnp.mean(per_head)


def _reference_multi_head_gat(h, adj, W, a_src, a_dst, merge="cat"):
    """Pure-JAX reference with identical dense-graph semantics."""
    outs = []
    for hd in range(W.shape[0]):
        z = h @ W[hd]
        s_src = jnp.sum(z * a_src[hd], axis=-1, keepdims=True)
        s_dst = jnp.sum(z * a_dst[hd], axis=-1, keepdims=True)
        logits = s_dst + s_src.T
        e = jnp.where(logits > 0, logits, 0.01 * logits)
        masked = jnp.where(adj > 0, e, -1e30)
        alpha = jax.nn.softmax(masked, axis=-1)
        outs.append(alpha @ z)
    if merge == "cat":
        return jnp.concatenate(outs, axis=1)
    return jnp.mean(jnp.stack(outs))


if __name__ == "__main__":
    N, in_dim, out_dim, num_heads = 16, 8, 8, 4

    key = jax.random.PRNGKey(0)
    k_h, k_adj, k_w, k_a = jax.random.split(key, 4)

    # Node features
    h = jax.random.normal(k_h, (N, in_dim), dtype=jnp.float32)

    # Random sparse directed graph + self-loops (adj[dst, src]).
    rand_edges = (jax.random.uniform(k_adj, (N, N)) < 0.3).astype(jnp.float32)
    adj = jnp.maximum(rand_edges, jnp.eye(N, dtype=jnp.float32))

    # Per-head fc weight and attn_fc weight (split into src/dst halves).
    W = jax.random.normal(k_w, (num_heads, in_dim, out_dim), dtype=jnp.float32) * 0.2
    attn_w = jax.random.normal(k_a, (num_heads, 2 * out_dim), dtype=jnp.float32) * 0.2
    a_src = attn_w[:, :out_dim].reshape(num_heads, 1, out_dim)
    a_dst = attn_w[:, out_dim:].reshape(num_heads, 1, out_dim)

    # tile_dst=8 -> 2 destination tiles: exercises the tiled grid, the per-head
    # persistent-z path, and the mask-tile reuse across the 4 inner head steps.
    out = multi_head_gat(h, adj, W, a_src, a_dst, merge="cat", tile_dst=8)
    out = jax.block_until_ready(out)

    ref = _reference_multi_head_gat(h, adj, W, a_src, a_dst, merge="cat")
    assert out.shape == (N, num_heads * out_dim)
    # Tolerance loosened slightly vs 1e-5 because the kernel uses the EUP approximate
    # reciprocal for the softmax normalization; errors are ~1e-4.
    assert jnp.allclose(out, ref, atol=2e-3, rtol=2e-3), "Pallas output mismatch vs reference"

    print("KERNEL_OK")
</pallas_src>

<mosaic_0001>
module attributes {stable_mosaic.version = 11 : i64} {
  func.func @_gat_kernel(%arg0: i32, %arg1: i32, %arg2: memref<16x8xf32, #tpu.memory_space<vmem>>, %arg3: memref<8x16xbf16, #tpu.memory_space<vmem>>, %arg4: memref<4x8x8xf32, #tpu.memory_space<vmem>>, %arg5: memref<4x1x8xf32, #tpu.memory_space<vmem>>, %arg6: memref<4x1x8xf32, #tpu.memory_space<vmem>>, %arg7: memref<1x8x8xf32, #tpu.memory_space<vmem>>, %arg8: memref<4x16x8xf32, #tpu.memory_space<vmem>>, %arg9: memref<4x1x16xf32, #tpu.memory_space<vmem>>) attributes {dimension_semantics = [#tpu.dimension_semantics<arbitrary>, #tpu.dimension_semantics<arbitrary>], iteration_bounds = array<i64: 2, 4>, scalar_prefetch = 0 : i64, scratch_operands = 2 : i64, tpu.core_type = #tpu.core_type<tc>, window_params = [{pipeline_mode = #tpu.pipeline_mode<synchronous>, transform_indices = @transform_0, window_bounds = array<i64: 16, 8>}, {transform_indices = @transform_1, window_bounds = array<i64: 8, 16>}, {pipeline_mode = #tpu.pipeline_mode<synchronous>, transform_indices = @transform_2, window_bounds = array<i64: 4, 8, 8>}, {pipeline_mode = #tpu.pipeline_mode<synchronous>, transform_indices = @transform_3, window_bounds = array<i64: 4, 1, 8>}, {pipeline_mode = #tpu.pipeline_mode<synchronous>, transform_indices = @transform_4, window_bounds = array<i64: 4, 1, 8>}, {transform_indices = @transform_5, window_bounds = array<i64: 1, 8, 8>}]} {
    %c0_i32 = arith.constant 0 : i32
    %0 = arith.cmpi eq, %arg0, %c0_i32 : i32
    %1 = arith.extui %0 : i1 to i32
    %c0_i32_0 = arith.constant 0 : i32
    %2 = arith.cmpi ne, %1, %c0_i32_0 : i32
    scf.if %2 {
      %c0_17 = arith.constant 0 : index
      %c0_18 = arith.constant 0 : index
      %47 = vector.load %arg2[%c0_17, %c0_18] : memref<16x8xf32, #tpu.memory_space<vmem>>, vector<16x8xf32>
      %48 = arith.index_cast %arg1 : i32 to index
      %c0_19 = arith.constant 0 : index
      %c0_20 = arith.constant 0 : index
      %49 = vector.load %arg4[%48, %c0_19, %c0_20] : memref<4x8x8xf32, #tpu.memory_space<vmem>>, vector<1x8x8xf32>
      %50 = vector.shape_cast %49 : vector<1x8x8xf32> to vector<8x8xf32>
      %cst_21 = arith.constant dense<0.000000e+00> : vector<16x8xf32>
      %51 = tpu.matmul %47, %50, %cst_21 {dimension_numbers = #tpu.dot_dimension_numbers<[1], [0], [0], [1], [0, 0, 1, 1], [], []>} : vector<16x8xf32>, vector<8x8xf32>, vector<16x8xf32> -> vector<16x8xf32>
      %52 = arith.index_cast %arg1 : i32 to index
      %c0_22 = arith.constant 0 : index
      %c0_23 = arith.constant 0 : index
      %53 = vector.load %arg8[%52, %c0_22, %c0_23] : memref<4x16x8xf32, #tpu.memory_space<vmem>>, vector<1x16x8xf32>
      %54 = vector.shape_cast %53 : vector<1x16x8xf32> to vector<16x8xf32>
      %55 = vector.shape_cast %51 : vector<16x8xf32> to vector<1x16x8xf32>
      tpu.vector_store %arg8[%52, %c0_22, %c0_23], %55 {strides = array<i32>} : memref<4x16x8xf32, #tpu.memory_space<vmem>>, vector<1x16x8xf32>,
      %56 = arith.index_cast %arg1 : i32 to index
      %c0_24 = arith.constant 0 : index
      %c0_25 = arith.constant 0 : index
      %57 = vector.load %arg5[%56, %c0_24, %c0_25] : memref<4x1x8xf32, #tpu.memory_space<vmem>>, vector<1x1x8xf32>
      %58 = vector.shape_cast %57 : vector<1x1x8xf32> to vector<1x8xf32>
      %cst_26 = arith.constant dense<0.000000e+00> : vector<1x16xf32>
      %59 = tpu.matmul %58, %51, %cst_26 {dimension_numbers = #tpu.dot_dimension_numbers<[1], [1], [0], [0], [0, 0, 1, 0], [], []>} : vector<1x8xf32>, vector<16x8xf32>, vector<1x16xf32> -> vector<1x16xf32>
      %60 = arith.index_cast %arg1 : i32 to index
      %c0_27 = arith.constant 0 : index
      %c0_28 = arith.constant 0 : index
      %61 = vector.load %arg9[%60, %c0_27, %c0_28] : memref<4x1x16xf32, #tpu.memory_space<vmem>>, vector<1x1x16xf32>
      %62 = vector.shape_cast %61 : vector<1x1x16xf32> to vector<1x16xf32>
      %63 = vector.shape_cast %59 : vector<1x16xf32> to vector<1x1x16xf32>
      tpu.vector_store %arg9[%60, %c0_27, %c0_28], %63 {strides = array<i32>} : memref<4x1x16xf32, #tpu.memory_space<vmem>>, vector<1x1x16xf32>,
    } else {
    }
    %c8_i32 = arith.constant 8 : i32
    %3 = arith.muli %arg0, %c8_i32 : i32
    %4 = tpu.assume_multiple %3, 8 : i32
    %5 = arith.index_cast %arg1 : i32 to index
    %6 = arith.index_cast %4 : i32 to index
    %c0 = arith.constant 0 : index
    %7 = vector.load %arg8[%5, %6, %c0] : memref<4x16x8xf32, #tpu.memory_space<vmem>>, vector<1x8x8xf32>
    %8 = vector.shape_cast %7 : vector<1x8x8xf32> to vector<8x8xf32>
    %9 = arith.index_cast %arg1 : i32 to index
    %c0_1 = arith.constant 0 : index
    %c0_2 = arith.constant 0 : index
    %10 = vector.load %arg6[%9, %c0_1, %c0_2] : memref<4x1x8xf32, #tpu.memory_space<vmem>>, vector<1x1x8xf32>
    %11 = vector.shape_cast %10 : vector<1x1x8xf32> to vector<1x8xf32>
    %12 = vector.broadcast %11 : vector<1x8xf32> to vector<8x8xf32>
    %13 = arith.mulf %8, %12 : vector<8x8xf32>
    %cst = arith.constant dense<0.000000e+00> : vector<8xf32>
    %14 = vector.multi_reduction <add>, %13, %cst [1] : vector<8x8xf32> to vector<8xf32>
    %15 = vector.shape_cast %14 : vector<8xf32> to vector<8x1xf32>
    %16 = arith.index_cast %arg1 : i32 to index
    %c0_3 = arith.constant 0 : index
    %c0_4 = arith.constant 0 : index
    %17 = vector.load %arg9[%16, %c0_3, %c0_4] : memref<4x1x16xf32, #tpu.memory_space<vmem>>, vector<1x1x16xf32>
    %18 = vector.shape_cast %17 : vector<1x1x16xf32> to vector<1x16xf32>
    %19 = vector.broadcast %15 : vector<8x1xf32> to vector<8x16xf32>
    %20 = vector.broadcast %18 : vector<1x16xf32> to vector<8x16xf32>
    %21 = arith.addf %19, %20 : vector<8x16xf32>
    %cst_5 = arith.constant 0.000000e+00 : f32
    %22 = vector.broadcast %cst_5 : f32 to vector<8x16xf32>
    %23 = arith.cmpf ogt, %21, %22 : vector<8x16xf32>
    %cst_6 = arith.constant 0.00999999977 : f32
    %24 = vector.broadcast %cst_6 : f32 to vector<8x16xf32>
    %25 = arith.mulf %24, %21 : vector<8x16xf32>
    %26 = arith.select %23, %21, %25 : vector<8x16xi1>, vector<8x16xf32>
    %c0_7 = arith.constant 0 : index
    %c0_8 = arith.constant 0 : index
    %27 = vector.load %arg3[%c0_7, %c0_8] : memref<8x16xbf16, #tpu.memory_space<vmem>>, vector<8x16xbf16>
    %28 = arith.extf %27 : vector<8x16xbf16> to vector<8x16xf32>
    %29 = arith.addf %26, %28 : vector<8x16xf32>
    %cst_9 = arith.constant dense<0xFF800000> : vector<8xf32>
    %30 = vector.multi_reduction <maximumf>, %29, %cst_9 [1] : vector<8x16xf32> to vector<8xf32>
    %31 = vector.shape_cast %30 : vector<8xf32> to vector<8x1xf32>
    %32 = vector.broadcast %31 : vector<8x1xf32> to vector<8x16xf32>
    %33 = arith.subf %29, %32 : vector<8x16xf32>
    %34 = math.exp %33 : vector<8x16xf32>
    %cst_10 = arith.constant dense<0.000000e+00> : vector<8xf32>
    %35 = vector.multi_reduction <add>, %34, %cst_10 [1] : vector<8x16xf32> to vector<8xf32>
    %36 = vector.shape_cast %35 : vector<8xf32> to vector<8x1xf32>
    %37 = arith.index_cast %arg1 : i32 to index
    %c0_11 = arith.constant 0 : index
    %c0_12 = arith.constant 0 : index
    %38 = vector.load %arg8[%37, %c0_11, %c0_12] : memref<4x16x8xf32, #tpu.memory_space<vmem>>, vector<1x16x8xf32>
    %39 = vector.shape_cast %38 : vector<1x16x8xf32> to vector<16x8xf32>
    %cst_13 = arith.constant dense<0.000000e+00> : vector<8x8xf32>
    %40 = tpu.matmul %34, %39, %cst_13 {dimension_numbers = #tpu.dot_dimension_numbers<[1], [0], [0], [1], [0, 0, 1, 1], [], []>} : vector<8x16xf32>, vector<16x8xf32>, vector<8x8xf32> -> vector<8x8xf32>
    %41 = tpu.reciprocal %36 {approx = true} : vector<8x1xf32> -> vector<8x1xf32>
    %42 = vector.broadcast %41 : vector<8x1xf32> to vector<8x8xf32>
    %43 = arith.mulf %40, %42 : vector<8x8xf32>
    %c0_14 = arith.constant 0 : index
    %c0_15 = arith.constant 0 : index
    %c0_16 = arith.constant 0 : index
    %44 = vector.load %arg7[%c0_14, %c0_15, %c0_16] : memref<1x8x8xf32, #tpu.memory_space<vmem>>, vector<1x8x8xf32>
    %45 = vector.shape_cast %44 : vector<1x8x8xf32> to vector<8x8xf32>
    %46 = vector.shape_cast %43 : vector<8x8xf32> to vector<1x8x8xf32>
    tpu.vector_store %arg7[%c0_14, %c0_15, %c0_16], %46 {strides = array<i32>} : memref<1x8x8xf32, #tpu.memory_space<vmem>>, vector<1x8x8xf32>,
    return
  }
  func.func @transform_0(%arg0: i32, %arg1: i32) -> (i32, i32) {
    %c0_i32 = arith.constant 0 : i32
    %c0_i32_0 = arith.constant 0 : i32
    %c0_i32_1 = arith.constant 0 : i32
    return %c0_i32, %c0_i32_0 : i32, i32
  }
  func.func @transform_1(%arg0: i32, %arg1: i32) -> (i32, i32) {
    %c0_i32 = arith.constant 0 : i32
    %c0_i32_0 = arith.constant 0 : i32
    return %arg0, %c0_i32 : i32, i32
  }
  func.func @transform_2(%arg0: i32, %arg1: i32) -> (i32, i32, i32) {
    %c0_i32 = arith.constant 0 : i32
    %c0_i32_0 = arith.constant 0 : i32
    %c0_i32_1 = arith.constant 0 : i32
    %c0_i32_2 = arith.constant 0 : i32
    return %c0_i32, %c0_i32_0, %c0_i32_1 : i32, i32, i32
  }
  func.func @transform_3(%arg0: i32, %arg1: i32) -> (i32, i32, i32) {
    %c0_i32 = arith.constant 0 : i32
    %c0_i32_0 = arith.constant 0 : i32
    %c0_i32_1 = arith.constant 0 : i32
    %c0_i32_2 = arith.constant 0 : i32
    return %c0_i32, %c0_i32_0, %c0_i32_1 : i32, i32, i32
  }
  func.func @transform_4(%arg0: i32, %arg1: i32) -> (i32, i32, i32) {
    %c0_i32 = arith.constant 0 : i32
    %c0_i32_0 = arith.constant 0 : i32
    %c0_i32_1 = arith.constant 0 : i32
    %c0_i32_2 = arith.constant 0 : i32
    return %c0_i32, %c0_i32_0, %c0_i32_1 : i32, i32, i32
  }
  func.func @transform_5(%arg0: i32, %arg1: i32) -> (i32, i32, i32) {
    %c0_i32 = arith.constant 0 : i32
    %c0_i32_0 = arith.constant 0 : i32
    return %arg1, %arg0, %c0_i32 : i32, i32, i32
  }
}

</mosaic_0001>

<bundles_post_ra>
// kernel: tpu_custom_call.1
= control target key start
LH: loop header
LB: loop body
LE: loop exit
PB: predicated region body
PF: predicated region fallthrough
CT: control target
= control target key end

     0   :  { %10 = vsyncpa [#allocation5], 0  ;;  %s899_s18 = smov 0   ;;  %s901_s19 = smov 0   ;;  %s1036_s0 = inlined_call_operand.vmem [shape: f32[16,8], index: 0, kind: input, shape index: {}]   ;;  %s1037_s1 = inlined_call_operand.vmem [shape: bf16[16,16], index: 1, kind: input, shape index: {}]   ;;  %s1038_s2 = inlined_call_operand.hbm [shape: f32[4,8,8], index: 2, kind: input, shape index: {}]   ;;  %s1039_s3 = inlined_call_operand.vmem [shape: f32[4,1,8], index: 3, kind: input, shape index: {}]   ;;  %s1040_s4 = inlined_call_operand.vmem [shape: f32[4,1,8], index: 4, kind: input, shape index: {}]   ;;  %s1041_s5 = inlined_call_operand.vmem [shape: f32[4,16,8], index: 5, kind: output, shape index: {}]  }
   0x1   :  { %s903_s20 = smov 0   ;;  %s905_s21 = smov 0  }
   0x2   :  { %s907_s22 = smov 0  }
   0x3 LB: > { %s665_s23 = sadd.s32 4294967295, %s858_s22   ;;  %s25_s24 = sadd.s32 1, %s850_s20  ;;  %s858_s22 = sphi %s907_s22, %s16_s22   ;;  %s854_s21 = sphi %s905_s21, %s1053_s21   ;;  %s850_s20 = sphi %s903_s20, %s1052_s20   ;;  %s846_s19 = sphi %s901_s19, %s1051_s19   ;;  %s842_s18 = sphi %s899_s18, %s1050_s18  }
   0x4   : > { %p26_p0 = scmp.ge.s32.totalorder %s25_s24, 4  ;;  %s28_s25 = sadd.s32 1, %s854_s21 }
   0x5   : > { %p667_p1 = scmp.ge.s32.totalorder %s858_s22, 1  ;;  %p171_p2 = scmp.lt.s32.totalorder %s858_s22, 9 }
   0x6   : > { %s1055_s24 = smov (%p26_p0, %s25_s24), 0  ;;  %s1057_s25 = smov (!%p26_p0, %s28_s25), %s854_s21 }
   0x7   : > { %p932_p3 = pnand %p667_p1, %p171_p2  ;;  %p30_p4 = scmp.ge.s32.totalorder %s1057_s25, 2 }
   0x8   : > { %p936_p5 = scmp.eq.s32.totalorder %s665_s23, 0  ;;  %s860_s28 = smov [#allocation4]  }
   0x9   : > { %s1045_s26 = scalar_select %p932_p3, 1, 0 }
   0xa   : > { %s1046_s27 = scalar_select %p936_p5, 1, 0 }
   0xb   : > { %p729_p6 = pneg %p932_p3  ;;  %s1059_s25 = smov (%p30_p4, %s1057_s25), 0 }
   0xc   : > { %s186_s29 = sshll.u32 %s860_s28, 4  ;;  %s788_s8 = scalar_lea.hbm %s1038_s2, 512  ;;  %s187_s29 = int_to_ptr.vmem [resolvable:$true] %s186_s29 }
   0xd   : > { %p946_p7 = pnand %p936_p5, %p729_p6  ;;  %p789_p8 = scmp.ne.s32.totalorder %s1038_s2, %s788_s8 }
   0xe   : > { %p795_p12 = scmp.lt.u32.totalorder %s788_s8, %s1038_s2 }
   0xf   : > { %p790_p9 = pneg %p946_p7 }
  0x11   : > { %p791_p10 = pnand %p790_p9, %p789_p8 }
  0x13   : > { %p792_p11 = pneg %p791_p10 }
  0x15   : > { %p797_p13 = pnand %p795_p12, %p792_p11 }
  0x17   : > { %800 = shalt.err (!%p797_p13)
}
  0x18   : > { %s801_s13 = scalar_lea.vmem %s187_s29, 512  ;;  %p809_p4 = scmp.lt.s32.totalorder %s187_s29, %s187_s29 }
  0x19   : > { %p802_p0 = scmp.ne.s32.totalorder %s187_s29, %s801_s13  ;;  %p810_p6 = scmp.lt.s32.totalorder %s801_s13, %s801_s13 }
  0x1b   : > { %p804_p1 = pnand %p802_p0, %p790_p9  ;;  %p811_p5 = por %p810_p6, %p809_p4 }
  0x1d   : > { %p805_p2 = pneg %p804_p1 }
  0x1f   : > { %p812_p3 = pnand %p811_p5, %p805_p2 }
  0x21   : > { %815 = shalt.err (!%p812_p3)
}
  0x22   : > { %s861_s14 = smov 128   ;;  %s862_s15 = smov 8  }
  0x23   : > { %732 = dma.hbm_to_vmem [thread:$0]  (!%p946_p7), %s1038_s2, 512, %s187_s29, [#allocation5], %s861_s14, %s861_s14, %s862_s15  }
  0x24   : > { %p1048_p8 = scmp.ne.s32.totalorder %s1045_s26, 0 }
  0x25   : > { %p1049_p10 = scmp.ne.s32.totalorder (!%p1048_p8), %s1046_s27, 0 }
  0x26   : > { %215 = sbr.rel (%p1048_p8) target bundleno = 1021 (0x3fd), region = 40 }
  0x2d   : > { %837 = dma.done.wait (%p1049_p10), [#allocation5], 512  }
  0x2e   : > { %839 = vsyncadd (%p1049_p10), [#allocation5], 4294966784  ;;  %p245_p3 = scmp.lt.s32.totalorder %s846_s19, 1  ;;  %p249_p5 = scmp.lt.s32.totalorder %s842_s18, 3 }
  0x2f   : > { %p675_p7 = scmp.ne.s32.totalorder %s846_s19, 0 }
  0x30   : > { %s246_s23 = scalar_select %p245_p3, %s846_s19, 1 }
  0x31   : > { %s250_s28 = scalar_select %p249_p5, %s842_s18, 3 }
  0x32   : > { %s672_s30 = sshll.u32 %s246_s23, 2  ;;  %260 = sbr.rel (%p675_p7) target bundleno = 492 (0x1ec), region = 48  ;;  %v261_v0 = vld [vmem:[%s1036_s0] sm:$0xff] (!%p675_p7)  ;;  %vm266_vm0 = vcmask (!%p675_p7), 64512   ;;  %v262_v2 = vld [vmem:[%s1036_s0 + $0x8] sm:$0xff] (!%p675_p7)  ;;  %v863_v3 = vmov (!%p675_p7), 0.0|0.0  }
  0x33   : > { %s979_s26 = scalar_lea.vmem %s1037_s1, %s672_s30  ;;  %s673_s7 = sshll.u32 %s250_s28, 1  ;;  %701 = vmatprep.mubr.msk.f32.mxu0 (!%p675_p7), %vm266_vm0, %v261_v0  ;;  %718 = vmatprep.subr.bf16.mxu1 (!%p675_p7), %v863_v3  ;;  %vm864_vm1 = vmmov (!%p675_p7), 0   ;;  %v865_v4 = vmov (!%p675_p7), 0.0   ;;  %vm720_vm2 = vmpackc.low (!%p675_p7), %vm266_vm0, %vm266_vm0  ;;  %vm434_vm3 = vcmask (!%p675_p7), 122880  }
  0x34   : > { %s254_s8 = sadd.s32 %s673_s7, %s246_s23  ;;  %s676_s12 = sshll.u32 (!%p675_p7), %s842_s18, 3  ;;  %708 = vmatprep.mubr.msk.f32.mxu1 (!%p675_p7), %vm864_vm1, %v865_v4 }
  0x35   : > { %s674_s9 = sshll.u32 %s254_s8, 3  ;;  %s264_s15 = scalar_lea.vmem (!%p675_p7), [#allocation4], %s676_s12 }
  0x36   : > { %s984_s11 = scalar_lea.vmem %s1041_s5, %s674_s9  ;;  %v265_v1 = vld [vmem:[%s264_s15] sm:$0xff] (!%p675_p7)  ;;  %s679_s23 = sshll.u32 (!%p675_p7), %s842_s18, 4 }
  0x37   : > { %699 = vmatprep.subr.mxu0 (!%p675_p7), %v265_v1  ;;  %s349_s28 = scalar_lea.vmem (!%p675_p7), [#allocation2], %s679_s23  ;;  %s352_s29 = scalar_lea.vmem (!%p675_p7), %s1039_s3, %s842_s18 }
  0x38   : > { %700 = vmatpush3.msra.mxu0 (!%p675_p7), %v265_v1  ;;  %v353_v8 = vld [vmem:[%s352_s29] sm:$0x1] (!%p675_p7)  ;;  %s433_s7 = scalar_lea.vmem (!%p675_p7), [#allocation3], %s842_s18 }
  0x39   : > { %702 = vmatmul.mubr.msk.f32.vlgmr.msra.gmra.mrb[0].mxu0 %vm266_vm0, %v262_v2 }
 0x10c   : > { %v703_v5 = vpop.f32.mrb[0].mxu0 }
 0x10d   : > { %351 = vst.msk [vmem:[%s349_s28 + $0x8] sm:$0xff] %vm266_vm0, %v703_v5  ;;  %v339_v6 = vpop.f32.mrb[1].mxu0 }
 0x10e   : > { %350 = vst.msk [vmem:[%s349_s28] sm:$0xff] %vm266_vm0, %v339_v6  ;;  %v719_v7 = vpack.c.bf16 %v703_v5, %v339_v6 }
 0x110   : > { %721 = vmatpush3.bf16.xpose.msk.msra.mxu1 %vm720_vm2, %v719_v7 }
 0x117   : > { %709 = vmatmul.mubr.msk.f32.vlgmr.msra.gmra.mrb[0].mxu1 %vm266_vm0, %v353_v8 }
 0x1ea   : > { %v429_v9 = vpop.f32.mrb[0].mxu1 }
 0x1eb   : > { %435 = vst.msk [vmem:[%s433_s7] sm:$0x1] %vm434_vm3, %v429_v9  ;;  %v710_v10 = vpop.f32.mrb[1].mxu1 }
 0x1ec PF: > { %s683_s8 = sshll.u32 %s846_s19, 3  ;;  %s684_s9 = sshll.u32 %s842_s18, 4  ;;  %vm450_vm4 = vcmask 64512   ;;  %v466_v16 = vld [vmem:[%s979_s26] sm:$0xf]  ;;  %vm469_vm6 = vcmask 130048  }
 0x1ed   : > { %s438_s10 = sadd.s32 %s684_s9, %s683_s8  ;;  %s441_s13 = scalar_lea.vmem %s1040_s4, %s842_s18  ;;  %v467_v19 = vunpack.c.l.bf16 %v466_v16  ;;  %v866_v24 = vmov 0.0|0.0   ;;  %vm867_vm7 = vmmov 0   ;;  %v868_v27 = vmov 0.0  }
 0x1ee   : > { %v685_v11 = vld [vmem:[%s441_s13] ss:$0 sm:$0xff]  ;;  %s439_s14 = scalar_lea.vmem [#allocation2], %s438_s10  ;;  %s454_s15 = scalar_lea.vmem [#allocation3], %s842_s18  ;;  %722 = vmatprep.subr.bf16.mxu0 %v866_v24  ;;  %715 = vmatprep.mubr.msk.f32.mxu0 %vm867_vm7, %v868_v27 }
 0x1ef   : > { %v440_v12 = vld [vmem:[%s439_s14] sm:$0xff]  ;;  %s479_s19 = scalar_lea.vmem [#allocation2], %s684_s9 }
 0x1f0   : > { %v449_v13 = vmul.f32 %v685_v11, %v440_v12  ;;  %v480_v25 = vld [vmem:[%s479_s19] sm:$0xff]  ;;  %v481_v26 = vld [vmem:[%s479_s19 + $0x8] sm:$0xff] }
 0x1f1   : > { %v723_v28 = vpack.c.bf16 %v481_v26, %v480_v25 }
 0x1f2   : > { %v451_v14 = vsel %vm450_vm4, %v449_v13, 0.0  ;;  %v686_v15 = vld [vmem:[%s454_s15] ss:$0 sm:$0xff] }
 0x1f3   : > { %452 = vadd.xlane.f32.xlu0 %v451_v14  ;;  %724 = vmatpush3.bf16.msra.mxu0 %v723_v28 }
 0x280   : > { %v453_v17 = vpop.xlane.xlu0 %452 }
 0x281   : > { %v462_v18 = vadd.f32 %v686_v15, %v453_v17 }
 0x283   : > { %vm463_vm5 = vcmp.gt.f32.partialorder %v462_v18, 0.0  ;;  %v464_v20 = vmul.f32 0.01, %v462_v18 }
 0x285   : > { %v465_v21 = vsel %vm463_vm5, %v462_v18, %v464_v20 }
 0x286   : > { %v468_v22 = vadd.f32 %v467_v19, %v465_v21 }
 0x288   : > { %v470_v23 = vsel %vm469_vm6, %v468_v22, -inf }
 0x289   : > { %471 = vmax.xlane.f32.xlu0 %v470_v23 }
 0x316   : > { %v472_v29 = vpop.xlane.xlu0 %471 }
 0x317   : > { %v473_v30 = vsub.f32 %v468_v22, %v472_v29 }
 0x319   : > { %v474_v31 = vmul.f32 1.442695, %v473_v30 }
 0x31b   : > { %784 = vpow2.f32 %v474_v31 }
 0x325   : > { %v785_v32 = vpop.eup %784 }
 0x326   : > { %716 = vmatmul.mubr.msk.f32.vlgmr.msra.gmra.mrb[0].mxu0 %vm469_vm6, %v785_v32  ;;  %v476_v33 = vsel %vm469_vm6, %v785_v32, 0.0 }
 0x327   : > { %477 = vadd.xlane.f32.xlu1 %v476_v33 }
 0x3b4   : > { %v478_v34 = vpop.xlane.xlu1 %477 }
 0x3b5   : > { %786 = vrcp.f32 %v478_v34 }
 0x3bf   : > { %v787_v35 = vpop.eup %786 }
 0x3f9   : > { %v551_v36 = vpop.f32.mrb[0].mxu0 }
 0x3fa   : > { %v556_v37 = vmul.f32 %v787_v35, %v551_v36  ;;  %v717_v38 = vpop.f32.mrb[1].mxu0 }
 0x3fc   : > { %557 = vst.msk [vmem:[%s984_s11] sm:$0xff] %vm450_vm4, %v556_v37 }
 0x3fd PF: > { %s16_s22 = sadd.s32 1, %s858_s22   ;;  %s1050_s18 = smov %s850_s20 }
 0x3fe   : > { %p13_p9 = scmp.ge.s32.totalorder %s16_s22, 10   ;;  %s1051_s19 = smov %s854_s21 }
 0x3ff   : > { %s1052_s20 = smov %s1055_s24  ;;  %s1053_s21 = smov %s1059_s25 }
 0x400   :  { %15 = sbr.rel (!%p13_p9) target bundleno = 3 (0x3), region = 87 }
 0x407   :  { %585 = vsyncpa [#allocation5], 1 }
 0x408   :  { %587 = vsyncpa [#allocation5 + $0x1], 1 }

</bundles_post_ra>
